<compile_context>
chip_gen: v7x
topology: tpu7x:2x2x1
jax: 0.10.0
libtpu: 0.0.40
codegen_flags: <defaults>
</compile_context>

<pallas_src>
import jax
import jax.numpy as jnp
from jax.experimental import pallas as pl
from jax.experimental.pallas import tpu as pltpu

_SUBLANE = 8
_VMEM_CAP_BYTES = 48 << 20   # stay below v7x's 64 MiB physical per-TC VMEM


def _round_up(x: int, m: int) -> int:
    return ((x + m - 1) // m) * m


def _multitag_kernel(x_ref, w_ref, o_ref):
    # x_ref: (TB, D) feature tile; w_ref: (D, L) MXU-ready, VMEM-resident weights.
    logits = jnp.dot(x_ref[...], w_ref[...], preferred_element_type=jnp.float32)
    # Sigmoid in f32 (EUP logistic path); safe on v5e (no bf16 VPU/EUP there).
    o_ref[...] = jax.nn.sigmoid(logits).astype(o_ref.dtype)


def prepare_multitag_weight(weight_w: jax.Array,
                            compute_dtype=jnp.bfloat16) -> jax.Array:
    """One-time (model-init) transform: (L, D) -> MXU-ready (D, L) in compute dtype.

    Do NOT call this per forward pass; hoist it out of the hot path.
    """
    return jnp.asarray(weight_w, dtype=compute_dtype).T


def deep_multi_tag_predict(
    high_feature: jax.Array,
    weight_w_t: jax.Array,
    *,
    block_b: int = 2048,
    out_dtype=jnp.float32,
) -> jax.Array:
    """high_feature: (B, D); weight_w_t: pre-transposed (D, L) -> probs: (B, L)."""
    B, D = high_feature.shape
    D2, L = weight_w_t.shape
    assert D == D2, "feature dim mismatch"

    compute_dtype = weight_w_t.dtype
    # No-op if the producer of high_feature already emits compute_dtype (ideal).
    x = high_feature.astype(compute_dtype)

    # Batch tile: multiple of 8 (sublane), capped by block_b, and never more
    # than ceil(B/2) so large B always gives >=2 grid points (both v7x TCs work).
    half_b = _round_up(-(-B // 2), _SUBLANE)
    TB = max(_SUBLANE, min(_round_up(block_b, _SUBLANE), half_b))
    B_pad = _round_up(B, TB)
    n_blocks = B_pad // TB
    if B_pad != B:
        x = jnp.pad(x, ((0, B_pad - B), (0, 0)))

    # VMEM budget: double-buffered feature + output tiles, single resident weight.
    in_bytes = jnp.dtype(compute_dtype).itemsize
    out_bytes = jnp.dtype(out_dtype).itemsize
    tile_bytes = (
        2 * TB * D * in_bytes      # feature tiles (double-buffered)
        + D * L * in_bytes         # resident weight block
        + 2 * TB * L * out_bytes   # output tiles (double-buffered)
    )
    vmem_limit = int(min(_VMEM_CAP_BYTES, max(4 << 20, 4 * tile_bytes)))

    out = pl.pallas_call(
        _multitag_kernel,
        out_shape=jax.ShapeDtypeStruct((B_pad, L), out_dtype),
        grid_spec=pltpu.PrefetchScalarGridSpec(
            num_scalar_prefetch=0,
            grid=(n_blocks,),
            in_specs=[
                # Streamed feature tile; last dim equals full extent -> no pad needed.
                pl.BlockSpec((TB, D), lambda i: (i, 0)),
                # Weight block resident across all batch tiles (same block index).
                pl.BlockSpec((D, L), lambda i: (0, 0)),
            ],
            out_specs=pl.BlockSpec((TB, L), lambda i: (i, 0)),
        ),
        compiler_params=pltpu.CompilerParams(
            dimension_semantics=("parallel",),
            vmem_limit_bytes=vmem_limit,
        ),
    )(x, weight_w_t)

    return out[:B] if B_pad != B else out


if __name__ == "__main__":
    # Small, deterministic problem: batch=8, aesthetic_feature_dim=32, label_num=14
    batch_size = 8
    aesthetic_feature_dim = 32
    label_num = 14

    key = jax.random.PRNGKey(0)
    k_feat, k_w = jax.random.split(key)

    # Parameter init matching torch.nn.init.normal_(mean=0, std=1)
    weight_w = jax.random.normal(
        k_w, (label_num, aesthetic_feature_dim), dtype=jnp.float32
    )
    high_feature = jax.random.normal(
        k_feat, (batch_size, aesthetic_feature_dim), dtype=jnp.float32
    )

    predict = jax.jit(
        deep_multi_tag_predict, static_argnames=("block_b", "out_dtype")
    )

    # --- Default path: bf16 MXU operands (all generations), f32 acc + f32 sigmoid.
    w_t_bf16 = prepare_multitag_weight(weight_w, jnp.bfloat16)  # once, at "init"
    probs = jax.block_until_ready(predict(high_feature, w_t_bf16))
    ref_bf16 = jax.nn.sigmoid(
        jax.lax.dot_general(
            high_feature.astype(jnp.bfloat16),
            weight_w.astype(jnp.bfloat16),
            dimension_numbers=(((1,), (1,)), ((), ())),
            preferred_element_type=jnp.float32,
        )
    )
    assert probs.shape == (batch_size, label_num)
    assert probs.dtype == jnp.float32
    assert jnp.allclose(probs, ref_bf16, atol=1e-2, rtol=1e-2)
    assert bool(jnp.all((probs >= 0.0) & (probs <= 1.0)))

    # --- f32 path: tight tolerance vs plain-JAX reference.
    w_t_f32 = prepare_multitag_weight(weight_w, jnp.float32)
    probs_f32 = jax.block_until_ready(predict(high_feature, w_t_f32))
    ref = jax.nn.sigmoid(high_feature @ weight_w.T)
    assert probs_f32.shape == (batch_size, label_num)
    assert jnp.allclose(probs_f32, ref, atol=1e-5, rtol=1e-5)

    print("KERNEL_OK")
</pallas_src>

<mosaic_0001>
module attributes {stable_mosaic.version = 11 : i64} {
  func.func @_multitag_kernel(%arg0: i32, %arg1: memref<8x32xbf16, #tpu.memory_space<vmem>>, %arg2: memref<32x14xbf16, #tpu.memory_space<vmem>>, %arg3: memref<8x14xf32, #tpu.memory_space<vmem>>) attributes {dimension_semantics = [#tpu.dimension_semantics<parallel>], iteration_bounds = array<i64: 1>, scalar_prefetch = 0 : i64, scratch_operands = 0 : i64, tpu.core_type = #tpu.core_type<tc>, window_params = [{transform_indices = @transform_0, window_bounds = array<i64: 8, 32>}, {pipeline_mode = #tpu.pipeline_mode<synchronous>, transform_indices = @transform_1, window_bounds = array<i64: 32, 14>}, {transform_indices = @transform_2, window_bounds = array<i64: 8, 14>}]} {
    %c0 = arith.constant 0 : index
    %c0_0 = arith.constant 0 : index
    %0 = vector.load %arg1[%c0, %c0_0] : memref<8x32xbf16, #tpu.memory_space<vmem>>, vector<8x32xbf16>
    %c0_1 = arith.constant 0 : index
    %c0_2 = arith.constant 0 : index
    %1 = vector.load %arg2[%c0_1, %c0_2] : memref<32x14xbf16, #tpu.memory_space<vmem>>, vector<32x14xbf16>
    %cst = arith.constant dense<0.000000e+00> : vector<8x14xf32>
    %2 = tpu.matmul %0, %1, %cst {dimension_numbers = #tpu.dot_dimension_numbers<[1], [0], [0], [1], [0, 0, 1, 1], [], []>} : vector<8x32xbf16>, vector<32x14xbf16>, vector<8x14xf32> -> vector<8x14xf32>
    %3 = arith.negf %2 : vector<8x14xf32>
    %4 = math.exp %3 : vector<8x14xf32>
    %cst_3 = arith.constant 1.000000e+00 : f32
    %5 = vector.broadcast %cst_3 : f32 to vector<8x14xf32>
    %6 = arith.addf %5, %4 : vector<8x14xf32>
    %7 = arith.divf %5, %6 : vector<8x14xf32>
    %c0_4 = arith.constant 0 : index
    %c0_5 = arith.constant 0 : index
    %8 = vector.load %arg3[%c0_4, %c0_5] : memref<8x14xf32, #tpu.memory_space<vmem>>, vector<8x14xf32>
    tpu.vector_store %arg3[%c0_4, %c0_5], %7 {strides = array<i32>} : memref<8x14xf32, #tpu.memory_space<vmem>>, vector<8x14xf32>,
    return
  }
  func.func @transform_0(%arg0: i32) -> (i32, i32) {
    %c0_i32 = arith.constant 0 : i32
    %c0_i32_0 = arith.constant 0 : i32
    return %arg0, %c0_i32 : i32, i32
  }
  func.func @transform_1(%arg0: i32) -> (i32, i32) {
    %c0_i32 = arith.constant 0 : i32
    %c0_i32_0 = arith.constant 0 : i32
    %c0_i32_1 = arith.constant 0 : i32
    return %c0_i32, %c0_i32_0 : i32, i32
  }
  func.func @transform_2(%arg0: i32) -> (i32, i32) {
    %c0_i32 = arith.constant 0 : i32
    %c0_i32_0 = arith.constant 0 : i32
    return %arg0, %c0_i32 : i32, i32
  }
}

</mosaic_0001>

<bundles_post_ra>
// kernel: deep_multi_tag_predict.1
= control target key start
LH: loop header
LB: loop body
LE: loop exit
PB: predicated region body
PF: predicated region fallthrough
CT: control target
= control target key end

     0   :  { %v144_v1 = vmov 0.0   ;;  %vm145_vm0 = vmmov 0   ;;  %s183_s0 = inlined_call_operand.vmem [shape: bf16[8,32], index: 0, kind: input, shape index: {}]   ;;  %s184_s1 = inlined_call_operand.vmem [shape: bf16[32,14], index: 1, kind: input, shape index: {}]   ;;  %s185_s2 = inlined_call_operand.hbm [shape: f32[8,14], index: 2, kind: output, shape index: {}]  }
   0x1   :  { %v114_v0 = vld [vmem:[%s184_s1] sm:$0xff]   ;;  %103 = vmatprep.subr.bf16.mxu0 %v144_v1  ;;  %v115_v2 = vld [vmem:[%s184_s1 + $0x8] sm:$0xff]   ;;  %107 = vmatprep.mubr.msk.bf16.mxu0 %vm145_vm0, %v144_v1 }
   0x2   :  { %104 = vmatpush3.bf16.msra.mxu0 %v114_v0 }
   0x3   :  { %7 = vsyncpa [#allocation3], 0  ;;  %105 = vmatprep.subr.bf16.mxu0 %v144_v1  ;;  %v13_v3 = vld [vmem:[%s183_s0] sm:$0xf]  ;;  %vm30_vm1 = vcmask 261120   ;;  %s146_s1 = smov [#allocation2]  }
   0x4   :  { %s88_s15 = sshll.u32 %s146_s1, 4  ;;  %vm80_vm2 = vcmask 113664   ;;  %s89_s15 = int_to_ptr.vmem [resolvable:$true] %s88_s15 }
   0x5   :  { %s120_s16 = scalar_lea.vmem %s89_s15, 128  ;;  %p125_p1 = scmp.lt.s32.totalorder %s89_s15, %s89_s15 }
   0x6   :  { %106 = vmatpush3.bf16.msra.mxu0 %v115_v2  ;;  %p121_p0 = scmp.ne.s32.totalorder %s89_s15, %s120_s16  ;;  %p126_p2 = scmp.lt.s32.totalorder %s120_s16, %s120_s16 }
   0x8   :  { %p127_p3 = por %p126_p2, %p125_p1 }
   0x9   :  { %108 = vmatmul.mubr.msk.bf16.vlgmr.msra.gmra.mrb[0].mxu0 %vm30_vm1, %v13_v3 }
   0xa   :  { %p128_p4 = pnand %p127_p3, %p121_p0 }
  0xdc   :  { %v68_v4 = vpop.f32.mrb[0].mxu0 }
  0xdd   :  { %v99_v5 = vmul.f32 -1.442695, %v68_v4  ;;  %v109_v6 = vpop.f32.mrb[1].mxu0 }
  0xde   :  { %v71_v7 = vpop.f32.mrb[2].mxu0 }
  0xdf   :  { %116 = vpow2.f32 %v99_v5  ;;  %v110_v8 = vpop.f32.mrb[3].mxu0 }
  0xe9   :  { %v117_v9 = vpop.eup %116 }
  0xea   :  { %v77_v10 = vadd.f32 1.0, %v117_v9 }
  0xec   :  { %118 = vrcp.f32 %v77_v10 }
  0xf6   :  { %v119_v11 = vpop.eup %118 }
  0xf7   :  { %81 = vst.msk [vmem:[#allocation2] sm:$0xff] %vm80_vm2, %v119_v11 }
  0xf8   :  { %131 = shalt.err (!%p128_p4)
}
  0xf9   :  { %s132_s18 = scalar_lea.hbm %s185_s2, 128 }
  0xfa   :  { %p133_p5 = scmp.ne.s32.totalorder %s185_s2, %s132_s18  ;;  %p136_p6 = scmp.lt.u32.totalorder %s132_s18, %s185_s2 }
  0xfc   :  { %p138_p7 = pnand %p136_p6, %p133_p5 }
  0xfe   :  { %141 = shalt.err (!%p138_p7)
}
  0xff   :  { %91 = dma.vmem_to_hbm [thread:$0]  %s89_s15, 128, %s185_s2, [#allocation3]  }
 0x100   :  { %142 = dma.done.wait [#allocation3], 128  }
 0x101   :  { %143 = vsyncadd [#allocation3], 4294967168 }
 0x102   :  { %95 = vsyncpa [#allocation3], 1 }

</bundles_post_ra>
